<compile_context>
chip_gen: v5e
topology: v5e:2x2
jax: 0.10.0
libtpu: 0.0.40
codegen_flags: <defaults>
</compile_context>

<pallas_src>
import functools

import jax
import jax.numpy as jnp
from jax import lax
from jax.experimental import pallas as pl
from jax.experimental.pallas import tpu as pltpu


def _round_up(n, m):
    return ((n + m - 1) // m) * m


# ------------------------------ fused kernel ---------------------------------

def _fused_kernel(x_ref, w_bn_ref, b_bn_ref, wcat_ref, b_cls_ref, y_ref,
                  g_ref, logits_ref, loss_ref, ce_acc, coh_acc, *,
                  n_concepts, n_res, n_classes, n_bn, batch, top_k, coeff_sim):
    """Fused concept + residual bottleneck forward, streamed over batch tiles."""
    f32 = jnp.float32
    step = pl.program_id(0)
    nsteps = pl.num_programs(0)
    tb = x_ref.shape[0]                 # batch tile
    W = g_ref.shape[1]                  # padded bottleneck width (multiple of 128)
    W2 = logits_ref.shape[1]            # padded class width      (multiple of 128)

    @pl.when(step == 0)
    def _init():
        ce_acc[...] = jnp.zeros_like(ce_acc)
        coh_acc[...] = jnp.zeros_like(coh_acc)

    # --- fused bottleneck matmul: [concepts | cres_raw | 0-pad] in one MXU pass.
    #     Weight already (D, W) on host -> canonical contraction, no XLU transpose.
    h = jnp.dot(x_ref[...], w_bn_ref[...],
                preferred_element_type=f32) + b_bn_ref[...]              # (tb, W)
    col = lax.broadcasted_iota(jnp.int32, (tb, W), 1)
    is_res = jnp.logical_and(col >= n_concepts, col < n_bn)

    # row-L2 normalize only the residual lanes (torch.linalg.vector_norm, dim=1).
    # NOTE: like the reference, an all-zero residual row produces NaN (no eps).
    res_sq = jnp.where(is_res, h * h, 0.0)
    inv_norm = lax.rsqrt(jnp.sum(res_sq, axis=-1, keepdims=True))        # (tb, 1)
    g = jnp.where(is_res, h * inv_norm, h)                               # (tb, W)
    g_ref[...] = g                       # lane-dense full-width store (pads are 0)

    # --- fused classifier matmul: logits = classifier(concepts) + res_classifier(cres_n)
    logits = jnp.dot(g, wcat_ref[...],
                     preferred_element_type=f32) + b_cls_ref[...]        # (tb, W2)
    logits_ref[...] = logits             # lane-dense full-width store (pads are 0)

    # --- cross-entropy partial (softmax restricted to the n_classes real lanes) ---
    ccol = lax.broadcasted_iota(jnp.int32, (tb, W2), 1)
    valid_c = ccol < n_classes
    m = jnp.max(jnp.where(valid_c, logits, -jnp.inf), axis=-1, keepdims=True)
    ez = jnp.where(valid_c, jnp.exp(logits - m), 0.0)
    lse = m + jnp.log(jnp.sum(ez, axis=-1, keepdims=True))               # (tb, 1)
    onehot = (ccol == y_ref[...]).astype(f32)
    picked = jnp.sum(onehot * logits, axis=-1, keepdims=True)            # (tb, 1)
    ce_acc[...] = ce_acc[...] + jnp.sum(lse - picked, keepdims=True)

    # --- coherency partial: when top_k >= B, "top-k per column" is all B rows,
    #     so the serialized selection loop collapses to one masked sum per tile.
    if top_k >= batch:
        coh_acc[...] = coh_acc[...] + jnp.sum(jnp.where(is_res, g, 0.0),
                                              keepdims=True)

    # --- finalize once, on the last tile (batch-invariant work runs exactly once) ---
    @pl.when(step == nsteps - 1)
    def _finalize():
        ce = ce_acc[...] / batch

        if top_k >= batch:
            coh = (1.0 / top_k) * (coh_acc[...] / (batch * n_res))
        else:
            # top_k < B: whole batch is guaranteed to be in this (single) tile.
            k = top_k
            row_f = lax.broadcasted_iota(jnp.int32, (tb, W), 0).astype(f32)
            res_cols = jnp.logical_and(
                lax.broadcasted_iota(jnp.int32, (1, W), 1) >= n_concepts,
                lax.broadcasted_iota(jnp.int32, (1, W), 1) < n_bn)
            work = jnp.where(is_res, g, -jnp.inf)    # masking hoisted out of the loop
            acc = jnp.zeros((1, 1), f32)
            for _ in range(k):                       # static, serialized selection
                col_max = jnp.max(work, axis=0, keepdims=True)           # (1, W)
                acc = acc + jnp.sum(jnp.where(res_cols, col_max, 0.0),
                                    keepdims=True)
                hit = work == col_max
                first = -jnp.max(jnp.where(hit, -row_f, -(tb + 1.0)),
                                 axis=0, keepdims=True)    # first row hitting max
                work = jnp.where(row_f == first, -jnp.inf, work)
            coh = (1.0 / top_k) * (acc / (k * n_res))

        # cos_similarity(residual_bottleneck.weight, cavs.weight) without a (W,W)
        # similarity matmul: for unit-norm rows a_i,
        #   sum_{i,j} <a_i, b_j> = <sum_i a_i, sum_j b_j>
        #   sum_{i!=j} <a_i, a_j> = |sum_i a_i|^2 - n_res
        wv = w_bn_ref[...].astype(f32)                                   # (D, W)
        colw = lax.broadcasted_iota(jnp.int32, (1, W), 1)
        wsq = jnp.sum(wv * wv, axis=0, keepdims=True)                    # (1, W)
        inv_w = lax.rsqrt(jnp.where(colw < n_bn, wsq, 1.0))              # pad-safe
        w_n = wv * inv_w                                                 # unit columns
        con_mask = colw < n_concepts
        res_mask = jnp.logical_and(colw >= n_concepts, colw < n_bn)
        s_con = jnp.sum(jnp.where(con_mask, w_n, 0.0), axis=1, keepdims=True)  # (D,1)
        s_res = jnp.sum(jnp.where(res_mask, w_n, 0.0), axis=1, keepdims=True)  # (D,1)
        lb = 1.0 - jnp.sum(s_res * s_con, keepdims=True) / (n_res * n_concepts)
        if n_res > 1:
            lw = 1.0 - ((jnp.sum(s_res * s_res, keepdims=True) - float(n_res))
                        / (n_res * (n_res - 1)))
        else:
            lw = jnp.zeros((1, 1), f32)

        loss_ref[...] = ce - coh + coeff_sim * (lw + lb)


# -------------------------------- wrapper -------------------------------------

@functools.partial(
    jax.jit, static_argnames=("top_k", "coeff_sim", "block_b", "compute_dtype"))
def adaptation_forward(x, y, params, *, top_k=10, coeff_sim=1.0,
                       block_b=None, compute_dtype="float32"):
    """Forward of Adaptation (adapt_rcb path). Returns (logits, concepts, concepts_res, loss)."""
    f32 = jnp.float32
    cdt = jnp.dtype(compute_dtype)
    B, D = x.shape
    n_concepts = params["cavs_w"].shape[0]
    n_classes = params["cls_w"].shape[0]
    n_res = params["res_bn_w"].shape[0]
    n_bn = n_concepts + n_res
    W = _round_up(n_bn, 128)            # lane-dense bottleneck slab width
    W2 = _round_up(n_classes, 128)      # lane-dense logits slab width

    # One-time / cacheable host-side packing (no per-step D-sized work in-kernel):
    # concat + transpose to (D, W), pad the output lanes to 128 so every in-kernel
    # store is full-width and every pad lane is exactly zero.
    w_bn = jnp.concatenate([params["cavs_w"], params["res_bn_w"]], axis=0)   # (n_bn, D)
    w_bn_t = jnp.pad(w_bn.T, ((0, 0), (0, W - n_bn))).astype(cdt)            # (D, W)
    b_bn = jnp.pad(jnp.concatenate([params["cavs_b"], params["res_bn_b"]]),
                   (0, W - n_bn)).reshape(1, W).astype(f32)
    wcat = jnp.concatenate([params["cls_w"], params["res_cls_w"]], axis=1).T  # (n_bn, n_cls)
    wcat = jnp.pad(wcat, ((0, W - n_bn), (0, W2 - n_classes))).astype(f32)    # (W, W2)
    b_cls = jnp.pad(params["cls_b"] + params["res_cls_b"],
                    (0, W2 - n_classes)).reshape(1, W2).astype(f32)
    xc = x.astype(cdt)
    y2d = y.astype(jnp.int32).reshape(B, 1)

    # --- batch tiling (weights stay resident; x / y / outputs stream) ---
    tb = B if block_b is None else int(block_b)
    if min(top_k, B) < B:
        tb = B      # TODO(synk): running cross-tile top-k for top_k < B
    if B % tb != 0 or (tb != B and tb % 8 != 0):
        tb = B      # TODO(synk): masked partial last tile
    nt = B // tb

    # --- VMEM budget: double buffers for every blocked operand + headroom ---
    est = 2 * (tb * D * cdt.itemsize          # x tile
               + D * W * cdt.itemsize         # bottleneck weight
               + W * W2 * 4 + (W + W2) * 4    # classifier weight + biases
               + tb * 4                       # y tile
               + tb * (W + W2) * 4            # output tiles
               + 2 * 8 * 128 * 4)             # scratch accumulators (padded)
    vmem_limit = int(min(max(2 * est, 8 << 20), 64 << 20))

    kernel = functools.partial(
        _fused_kernel, n_concepts=n_concepts, n_res=n_res, n_classes=n_classes,
        n_bn=n_bn, batch=B, top_k=top_k, coeff_sim=coeff_sim)

    g_slab, logit_slab, loss = pl.pallas_call(
        kernel,
        grid=(nt,),
        in_specs=[
            pl.BlockSpec((tb, D), lambda i: (i, 0)),     # x: streamed over batch
            pl.BlockSpec((D, W), lambda i: (0, 0)),      # weights: resident
            pl.BlockSpec((1, W), lambda i: (0, 0)),
            pl.BlockSpec((W, W2), lambda i: (0, 0)),
            pl.BlockSpec((1, W2), lambda i: (0, 0)),
            pl.BlockSpec((tb, 1), lambda i: (i, 0)),     # y: per-tile
        ],
        out_specs=[
            pl.BlockSpec((tb, W), lambda i: (i, 0)),     # lane-dense concepts|cres slab
            pl.BlockSpec((tb, W2), lambda i: (i, 0)),    # lane-dense logits slab
            pl.BlockSpec((1, 1), lambda i: (0, 0)),      # scalar loss (written last)
        ],
        out_shape=(jax.ShapeDtypeStruct((B, W), f32),
                   jax.ShapeDtypeStruct((B, W2), f32),
                   jax.ShapeDtypeStruct((1, 1), f32)),
        scratch_shapes=[pltpu.VMEM((1, 1), f32),         # CE partial
                        pltpu.VMEM((1, 1), f32)],        # coherency partial
        compiler_params=pltpu.CompilerParams(
            dimension_semantics=("arbitrary",),
            vmem_limit_bytes=vmem_limit),
    )(xc, w_bn_t, b_bn, wcat, b_cls, y2d)

    concepts = g_slab[:, :n_concepts]
    concepts_res = g_slab[:, n_concepts:n_bn]
    logits = logit_slab[:, :n_classes]
    return logits, concepts, concepts_res, loss[0, 0]


# ----------------------------- pure-JAX reference -----------------------------

def _reference(x, y, p, top_k=10, coeff_sim=1.0):
    hp = lax.Precision.HIGHEST
    concepts = jnp.dot(x, p["cavs_w"].T, precision=hp) + p["cavs_b"]
    outputs = jnp.dot(concepts, p["cls_w"].T, precision=hp) + p["cls_b"]
    cres = jnp.dot(x, p["res_bn_w"].T, precision=hp) + p["res_bn_b"]
    cres = cres / jnp.linalg.norm(cres, axis=1, keepdims=True)
    outputs_res = jnp.dot(cres, p["res_cls_w"].T, precision=hp) + p["res_cls_b"]
    logits = outputs + outputs_res

    logp = jax.nn.log_softmax(logits, axis=-1)
    ce = -jnp.mean(logp[jnp.arange(x.shape[0]), y])
    k = min(top_k, x.shape[0])
    topv = lax.top_k(cres.T, k)[0]
    coh = (1.0 / top_k) * jnp.mean(topv)

    def nr(w):
        return w / jnp.linalg.norm(w, axis=1, keepdims=True)

    x1, x2 = nr(p["res_bn_w"]), nr(p["cavs_w"])
    n1 = x1.shape[0]
    sim11 = jnp.dot(x1, x1.T, precision=hp) * (1.0 - jnp.eye(n1))
    lw = 1.0 - jnp.sum(sim11) / (n1 * (n1 - 1)) if n1 > 1 else 0.0
    lb = 1.0 - jnp.mean(jnp.dot(x1, x2.T, precision=hp))
    loss = ce - coh + coeff_sim * (lw + lb)
    return logits, concepts, cres, loss


# ---------------------------------- main ---------------------------------------

if __name__ == "__main__":
    B, D = 8, 32               # batch, d_embedding
    n_concepts, n_classes = 16, 4
    n_res = 5                  # num_res_concepts (module default)

    key = jax.random.PRNGKey(0)
    ks = jax.random.split(key, 12)
    f32 = jnp.float32
    params = {
        "cavs_w":    (jax.random.normal(ks[0], (n_concepts, D)) * 0.1).astype(f32),
        "cavs_b":    (jax.random.normal(ks[1], (n_concepts,)) * 0.1).astype(f32),
        "cls_w":     (jax.random.normal(ks[2], (n_classes, n_concepts)) * 0.1).astype(f32),
        "cls_b":     (jax.random.normal(ks[3], (n_classes,)) * 0.1).astype(f32),
        "res_bn_w":  (jax.random.normal(ks[4], (n_res, D)) * 0.1).astype(f32),
        "res_bn_b":  (jax.random.normal(ks[5], (n_res,)) * 0.1).astype(f32),
        "res_cls_w": (jax.random.normal(ks[6], (n_classes, n_res)) * 0.1).astype(f32),
        "res_cls_b": (jax.random.normal(ks[7], (n_classes,)) * 0.1).astype(f32),
    }
    x = jax.random.normal(ks[8], (B, D)).astype(f32)
    y = jax.random.randint(ks[9], (B,), 0, n_classes)

    # 1) module-default config (top_k=10 >= B=8 -> collapsed coherency, 1 tile)
    logits, concepts, concepts_res, loss = adaptation_forward(x, y, params)
    jax.block_until_ready((logits, concepts, concepts_res, loss))
    r_logits, r_concepts, r_cres, r_loss = _reference(x, y, params, top_k=10)
    assert jnp.allclose(logits, r_logits, rtol=2e-3, atol=2e-3)
    assert jnp.allclose(concepts, r_concepts, rtol=2e-3, atol=2e-3)
    assert jnp.allclose(concepts_res, r_cres, rtol=2e-3, atol=2e-3)
    assert jnp.allclose(loss, r_loss, rtol=2e-3, atol=2e-3)

    # 2) multi-tile batch grid (B=32, TB=8 -> 4 tiles; CE/coherency accumulate in
    #    scratch, weights resident, similarity + finalize run once on last tile)
    B2 = 32
    x2 = jax.random.normal(ks[10], (B2, D)).astype(f32)
    y2 = jax.random.randint(ks[11], (B2,), 0, n_classes)
    l2, c2, r2, s2 = adaptation_forward(x2, y2, params, top_k=B2, block_b=8)
    jax.block_until_ready((l2, s2))
    rl2, rc2, rr2, rs2 = _reference(x2, y2, params, top_k=B2)
    assert jnp.allclose(l2, rl2, rtol=2e-3, atol=2e-3)
    assert jnp.allclose(c2, rc2, rtol=2e-3, atol=2e-3)
    assert jnp.allclose(r2, rr2, rtol=2e-3, atol=2e-3)
    assert jnp.allclose(s2, rs2, rtol=2e-3, atol=2e-3)

    # 3) top_k < B path (serialized selection loop, single tile)
    l3, c3, r3, s3 = adaptation_forward(x2, y2, params, top_k=4)
    jax.block_until_ready(s3)
    rl3, _, _, rs3 = _reference(x2, y2, params, top_k=4)
    assert jnp.allclose(l3, rl3, rtol=2e-3, atol=2e-3)
    assert jnp.allclose(s3, rs3, rtol=2e-3, atol=2e-3)

    # 4) bf16 compute dtype (v6e/v7x recommendation): norms/softmax stay f32
    lb_, cb_, rb_, sb_ = adaptation_forward(x, y, params, compute_dtype="bfloat16")
    jax.block_until_ready(sb_)
    assert bool(jnp.all(jnp.isfinite(lb_))) and bool(jnp.isfinite(sb_))
    assert jnp.allclose(lb_, r_logits, rtol=5e-2, atol=5e-2)

    print("KERNEL_OK")
</pallas_src>

<mosaic_0001>
module attributes {stable_mosaic.version = 11 : i64} {
  func.func @_fused_kernel(%arg0: i32, %arg1: memref<8x32xf32, #tpu.memory_space<vmem>>, %arg2: memref<32x128xf32, #tpu.memory_space<vmem>>, %arg3: memref<1x128xf32, #tpu.memory_space<vmem>>, %arg4: memref<128x128xf32, #tpu.memory_space<vmem>>, %arg5: memref<1x128xf32, #tpu.memory_space<vmem>>, %arg6: memref<8x1xi32, #tpu.memory_space<vmem>>, %arg7: memref<8x128xf32, #tpu.memory_space<vmem>>, %arg8: memref<8x128xf32, #tpu.memory_space<vmem>>, %arg9: memref<1x1xf32, #tpu.memory_space<vmem>>, %arg10: memref<1x1xf32, #tpu.memory_space<vmem>>, %arg11: memref<1x1xf32, #tpu.memory_space<vmem>>) attributes {dimension_semantics = [#tpu.dimension_semantics<arbitrary>], iteration_bounds = array<i64: 1>, scalar_prefetch = 0 : i64, scratch_operands = 2 : i64, tpu.core_type = #tpu.core_type<tc>, window_params = [{transform_indices = @transform_0, window_bounds = array<i64: 8, 32>}, {pipeline_mode = #tpu.pipeline_mode<synchronous>, transform_indices = @transform_1, window_bounds = array<i64: 32, 128>}, {pipeline_mode = #tpu.pipeline_mode<synchronous>, transform_indices = @transform_2, window_bounds = array<i64: 1, 128>}, {pipeline_mode = #tpu.pipeline_mode<synchronous>, transform_indices = @transform_3, window_bounds = array<i64: 128, 128>}, {pipeline_mode = #tpu.pipeline_mode<synchronous>, transform_indices = @transform_4, window_bounds = array<i64: 1, 128>}, {transform_indices = @transform_5, window_bounds = array<i64: 8, 1>}, {transform_indices = @transform_6, window_bounds = array<i64: 8, 128>}, {transform_indices = @transform_7, window_bounds = array<i64: 8, 128>}, {pipeline_mode = #tpu.pipeline_mode<synchronous>, transform_indices = @transform_8, window_bounds = array<i64: 1, 1>}]} {
    %c0_i32 = arith.constant 0 : i32
    %0 = arith.cmpi eq, %arg0, %c0_i32 : i32
    %1 = arith.extui %0 : i1 to i32
    %c0_i32_0 = arith.constant 0 : i32
    %2 = arith.cmpi ne, %1, %c0_i32_0 : i32
    scf.if %2 {
      %cst_37 = arith.constant 0.000000e+00 : f32
      %77 = vector.broadcast %cst_37 : f32 to vector<1x1xf32>
      %c0_38 = arith.constant 0 : index
      %c0_39 = arith.constant 0 : index
      %78 = vector.load %arg10[%c0_38, %c0_39] : memref<1x1xf32, #tpu.memory_space<vmem>>, vector<1x1xf32>
      tpu.vector_store %arg10[%c0_38, %c0_39], %77 {strides = array<i32>} : memref<1x1xf32, #tpu.memory_space<vmem>>, vector<1x1xf32>,
      %cst_40 = arith.constant 0.000000e+00 : f32
      %79 = vector.broadcast %cst_40 : f32 to vector<1x1xf32>
      %c0_41 = arith.constant 0 : index
      %c0_42 = arith.constant 0 : index
      %80 = vector.load %arg11[%c0_41, %c0_42] : memref<1x1xf32, #tpu.memory_space<vmem>>, vector<1x1xf32>
      tpu.vector_store %arg11[%c0_41, %c0_42], %79 {strides = array<i32>} : memref<1x1xf32, #tpu.memory_space<vmem>>, vector<1x1xf32>,
    } else {
    }
    %c0 = arith.constant 0 : index
    %c0_1 = arith.constant 0 : index
    %3 = vector.load %arg1[%c0, %c0_1] : memref<8x32xf32, #tpu.memory_space<vmem>>, vector<8x32xf32>
    %c0_2 = arith.constant 0 : index
    %c0_3 = arith.constant 0 : index
    %4 = vector.load %arg2[%c0_2, %c0_3] : memref<32x128xf32, #tpu.memory_space<vmem>>, vector<32x128xf32>
    %cst = arith.constant dense<0.000000e+00> : vector<8x128xf32>
    %5 = tpu.matmul %3, %4, %cst {dimension_numbers = #tpu.dot_dimension_numbers<[1], [0], [0], [1], [0, 0, 1, 1], [], []>} : vector<8x32xf32>, vector<32x128xf32>, vector<8x128xf32> -> vector<8x128xf32>
    %c0_4 = arith.constant 0 : index
    %c0_5 = arith.constant 0 : index
    %6 = vector.load %arg3[%c0_4, %c0_5] : memref<1x128xf32, #tpu.memory_space<vmem>>, vector<1x128xf32>
    %7 = vector.broadcast %6 : vector<1x128xf32> to vector<8x128xf32>
    %8 = arith.addf %5, %7 : vector<8x128xf32>
    %9 = tpu.iota {dimensions = array<i32: 1>} : vector<8x128xi32>
    %c16_i32 = arith.constant 16 : i32
    %10 = vector.broadcast %c16_i32 : i32 to vector<8x128xi32>
    %11 = arith.cmpi sge, %9, %10 : vector<8x128xi32>
    %c21_i32 = arith.constant 21 : i32
    %12 = vector.broadcast %c21_i32 : i32 to vector<8x128xi32>
    %13 = arith.cmpi slt, %9, %12 : vector<8x128xi32>
    %14 = arith.andi %11, %13 : vector<8x128xi1>
    %15 = arith.mulf %8, %8 : vector<8x128xf32>
    %cst_6 = arith.constant 0.000000e+00 : f32
    %16 = vector.broadcast %cst_6 : f32 to vector<8x128xf32>
    %17 = arith.select %14, %15, %16 : vector<8x128xi1>, vector<8x128xf32>
    %cst_7 = arith.constant dense<0.000000e+00> : vector<8xf32>
    %18 = vector.multi_reduction <add>, %17, %cst_7 [1] : vector<8x128xf32> to vector<8xf32>
    %19 = vector.shape_cast %18 : vector<8xf32> to vector<8x1xf32>
    %20 = math.rsqrt %19 : vector<8x1xf32>
    %21 = vector.broadcast %20 : vector<8x1xf32> to vector<8x128xf32>
    %22 = arith.mulf %8, %21 : vector<8x128xf32>
    %23 = arith.select %14, %22, %8 : vector<8x128xi1>, vector<8x128xf32>
    %c0_8 = arith.constant 0 : index
    %c0_9 = arith.constant 0 : index
    %24 = vector.load %arg7[%c0_8, %c0_9] : memref<8x128xf32, #tpu.memory_space<vmem>>, vector<8x128xf32>
    tpu.vector_store %arg7[%c0_8, %c0_9], %23 {strides = array<i32>} : memref<8x128xf32, #tpu.memory_space<vmem>>, vector<8x128xf32>,
    %c0_10 = arith.constant 0 : index
    %c0_11 = arith.constant 0 : index
    %25 = vector.load %arg4[%c0_10, %c0_11] : memref<128x128xf32, #tpu.memory_space<vmem>>, vector<128x128xf32>
    %cst_12 = arith.constant dense<0.000000e+00> : vector<8x128xf32>
    %26 = tpu.matmul %23, %25, %cst_12 {dimension_numbers = #tpu.dot_dimension_numbers<[1], [0], [0], [1], [0, 0, 1, 1], [], []>} : vector<8x128xf32>, vector<128x128xf32>, vector<8x128xf32> -> vector<8x128xf32>
    %c0_13 = arith.constant 0 : index
    %c0_14 = arith.constant 0 : index
    %27 = vector.load %arg5[%c0_13, %c0_14] : memref<1x128xf32, #tpu.memory_space<vmem>>, vector<1x128xf32>
    %28 = vector.broadcast %27 : vector<1x128xf32> to vector<8x128xf32>
    %29 = arith.addf %26, %28 : vector<8x128xf32>
    %c0_15 = arith.constant 0 : index
    %c0_16 = arith.constant 0 : index
    %30 = vector.load %arg8[%c0_15, %c0_16] : memref<8x128xf32, #tpu.memory_space<vmem>>, vector<8x128xf32>
    tpu.vector_store %arg8[%c0_15, %c0_16], %29 {strides = array<i32>} : memref<8x128xf32, #tpu.memory_space<vmem>>, vector<8x128xf32>,
    %31 = tpu.iota {dimensions = array<i32: 1>} : vector<8x128xi32>
    %c4_i32 = arith.constant 4 : i32
    %32 = vector.broadcast %c4_i32 : i32 to vector<8x128xi32>
    %33 = arith.cmpi slt, %31, %32 : vector<8x128xi32>
    %cst_17 = arith.constant 0xFF800000 : f32
    %34 = vector.broadcast %cst_17 : f32 to vector<8x128xf32>
    %35 = arith.select %33, %29, %34 : vector<8x128xi1>, vector<8x128xf32>
    %cst_18 = arith.constant dense<0xFF800000> : vector<8xf32>
    %36 = vector.multi_reduction <maximumf>, %35, %cst_18 [1] : vector<8x128xf32> to vector<8xf32>
    %37 = vector.shape_cast %36 : vector<8xf32> to vector<8x1xf32>
    %38 = vector.broadcast %37 : vector<8x1xf32> to vector<8x128xf32>
    %39 = arith.subf %29, %38 : vector<8x128xf32>
    %40 = math.exp %39 : vector<8x128xf32>
    %cst_19 = arith.constant 0.000000e+00 : f32
    %41 = vector.broadcast %cst_19 : f32 to vector<8x128xf32>
    %42 = arith.select %33, %40, %41 : vector<8x128xi1>, vector<8x128xf32>
    %cst_20 = arith.constant dense<0.000000e+00> : vector<8xf32>
    %43 = vector.multi_reduction <add>, %42, %cst_20 [1] : vector<8x128xf32> to vector<8xf32>
    %44 = vector.shape_cast %43 : vector<8xf32> to vector<8x1xf32>
    %45 = math.log %44 : vector<8x1xf32>
    %46 = arith.addf %37, %45 : vector<8x1xf32>
    %c0_21 = arith.constant 0 : index
    %c0_22 = arith.constant 0 : index
    %47 = vector.load %arg6[%c0_21, %c0_22] : memref<8x1xi32, #tpu.memory_space<vmem>>, vector<8x1xi32>
    %48 = vector.broadcast %47 : vector<8x1xi32> to vector<8x128xi32>
    %49 = arith.cmpi eq, %31, %48 : vector<8x128xi32>
    %50 = arith.extui %49 : vector<8x128xi1> to vector<8x128xi32>
    %51 = arith.sitofp %50 : vector<8x128xi32> to vector<8x128xf32>
    %52 = arith.mulf %51, %29 : vector<8x128xf32>
    %cst_23 = arith.constant dense<0.000000e+00> : vector<8xf32>
    %53 = vector.multi_reduction <add>, %52, %cst_23 [1] : vector<8x128xf32> to vector<8xf32>
    %54 = vector.shape_cast %53 : vector<8xf32> to vector<8x1xf32>
    %c0_24 = arith.constant 0 : index
    %c0_25 = arith.constant 0 : index
    %55 = vector.load %arg10[%c0_24, %c0_25] : memref<1x1xf32, #tpu.memory_space<vmem>>, vector<1x1xf32>
    %56 = arith.subf %46, %54 : vector<8x1xf32>
    %57 = vector.shape_cast %56 : vector<8x1xf32> to vector<1x8x1xf32>
    %cst_26 = arith.constant dense<0.000000e+00> : vector<1xf32>
    %58 = vector.multi_reduction <add>, %57, %cst_26 [1, 2] : vector<1x8x1xf32> to vector<1xf32>
    %59 = vector.shape_cast %58 : vector<1xf32> to vector<1x1x1xf32>
    %60 = vector.extract %59[0, 0, 0] : f32 from vector<1x1x1xf32>
    %61 = vector.broadcast %60 : f32 to vector<1x1xf32>
    %62 = arith.addf %55, %61 : vector<1x1xf32>
    %c0_27 = arith.constant 0 : index
    %c0_28 = arith.constant 0 : index
    %63 = vector.load %arg10[%c0_27, %c0_28] : memref<1x1xf32, #tpu.memory_space<vmem>>, vector<1x1xf32>
    tpu.vector_store %arg10[%c0_27, %c0_28], %62 {strides = array<i32>} : memref<1x1xf32, #tpu.memory_space<vmem>>, vector<1x1xf32>,
    %c0_29 = arith.constant 0 : index
    %c0_30 = arith.constant 0 : index
    %64 = vector.load %arg11[%c0_29, %c0_30] : memref<1x1xf32, #tpu.memory_space<vmem>>, vector<1x1xf32>
    %cst_31 = arith.constant 0.000000e+00 : f32
    %65 = vector.broadcast %cst_31 : f32 to vector<8x128xf32>
    %66 = arith.select %14, %23, %65 : vector<8x128xi1>, vector<8x128xf32>
    %67 = vector.shape_cast %66 : vector<8x128xf32> to vector<1x8x128xf32>
    %cst_32 = arith.constant dense<0.000000e+00> : vector<1xf32>
    %68 = vector.multi_reduction <add>, %67, %cst_32 [1, 2] : vector<1x8x128xf32> to vector<1xf32>
    %69 = vector.shape_cast %68 : vector<1xf32> to vector<1x1x1xf32>
    %70 = vector.extract %69[0, 0, 0] : f32 from vector<1x1x1xf32>
    %71 = vector.broadcast %70 : f32 to vector<1x1xf32>
    %72 = arith.addf %64, %71 : vector<1x1xf32>
    %c0_33 = arith.constant 0 : index
    %c0_34 = arith.constant 0 : index
    %73 = vector.load %arg11[%c0_33, %c0_34] : memref<1x1xf32, #tpu.memory_space<vmem>>, vector<1x1xf32>
    tpu.vector_store %arg11[%c0_33, %c0_34], %72 {strides = array<i32>} : memref<1x1xf32, #tpu.memory_space<vmem>>, vector<1x1xf32>,
    %c0_i32_35 = arith.constant 0 : i32
    %74 = arith.cmpi eq, %arg0, %c0_i32_35 : i32
    %75 = arith.extui %74 : i1 to i32
    %c0_i32_36 = arith.constant 0 : i32
    %76 = arith.cmpi ne, %75, %c0_i32_36 : i32
    scf.if %76 {
      %c0_37 = arith.constant 0 : index
      %c0_38 = arith.constant 0 : index
      %77 = vector.load %arg10[%c0_37, %c0_38] : memref<1x1xf32, #tpu.memory_space<vmem>>, vector<1x1xf32>
      %cst_39 = arith.constant 8.000000e+00 : f32
      %78 = vector.broadcast %cst_39 : f32 to vector<1x1xf32>
      %79 = arith.divf %77, %78 : vector<1x1xf32>
      %c0_40 = arith.constant 0 : index
      %c0_41 = arith.constant 0 : index
      %80 = vector.load %arg11[%c0_40, %c0_41] : memref<1x1xf32, #tpu.memory_space<vmem>>, vector<1x1xf32>
      %cst_42 = arith.constant 4.000000e+01 : f32
      %81 = vector.broadcast %cst_42 : f32 to vector<1x1xf32>
      %82 = arith.divf %80, %81 : vector<1x1xf32>
      %cst_43 = arith.constant 1.000000e-01 : f32
      %83 = vector.broadcast %cst_43 : f32 to vector<1x1xf32>
      %84 = arith.mulf %83, %82 : vector<1x1xf32>
      %c0_44 = arith.constant 0 : index
      %c0_45 = arith.constant 0 : index
      %85 = vector.load %arg2[%c0_44, %c0_45] : memref<32x128xf32, #tpu.memory_space<vmem>>, vector<32x128xf32>
      %86 = tpu.iota {dimensions = array<i32: 1>} : vector<1x128xi32>
      %87 = arith.mulf %85, %85 : vector<32x128xf32>
      %cst_46 = arith.constant dense<0.000000e+00> : vector<128xf32>
      %88 = vector.multi_reduction <add>, %87, %cst_46 [0] : vector<32x128xf32> to vector<128xf32>
      %89 = vector.shape_cast %88 : vector<128xf32> to vector<1x128xf32>
      %c21_i32_47 = arith.constant 21 : i32
      %90 = vector.broadcast %c21_i32_47 : i32 to vector<1x128xi32>
      %91 = arith.cmpi slt, %86, %90 : vector<1x128xi32>
      %cst_48 = arith.constant 1.000000e+00 : f32
      %92 = vector.broadcast %cst_48 : f32 to vector<1x128xf32>
      %93 = arith.select %91, %89, %92 : vector<1x128xi1>, vector<1x128xf32>
      %94 = math.rsqrt %93 : vector<1x128xf32>
      %95 = vector.broadcast %94 : vector<1x128xf32> to vector<32x128xf32>
      %96 = arith.mulf %85, %95 : vector<32x128xf32>
      %c16_i32_49 = arith.constant 16 : i32
      %97 = vector.broadcast %c16_i32_49 : i32 to vector<1x128xi32>
      %98 = arith.cmpi slt, %86, %97 : vector<1x128xi32>
      %c16_i32_50 = arith.constant 16 : i32
      %99 = vector.broadcast %c16_i32_50 : i32 to vector<1x128xi32>
      %100 = arith.cmpi sge, %86, %99 : vector<1x128xi32>
      %c21_i32_51 = arith.constant 21 : i32
      %101 = vector.broadcast %c21_i32_51 : i32 to vector<1x128xi32>
      %102 = arith.cmpi slt, %86, %101 : vector<1x128xi32>
      %103 = arith.andi %100, %102 : vector<1x128xi1>
      %cst_52 = arith.constant 0.000000e+00 : f32
      %104 = vector.shape_cast %98 : vector<1x128xi1> to vector<1x128xi1>
      %105 = vector.broadcast %104 : vector<1x128xi1> to vector<32x128xi1>
      %106 = vector.broadcast %cst_52 : f32 to vector<32x128xf32>
      %107 = arith.select %105, %96, %106 : vector<32x128xi1>, vector<32x128xf32>
      %cst_53 = arith.constant dense<0.000000e+00> : vector<32xf32>
      %108 = vector.multi_reduction <add>, %107, %cst_53 [1] : vector<32x128xf32> to vector<32xf32>
      %109 = vector.shape_cast %108 : vector<32xf32> to vector<32x1xf32>
      %cst_54 = arith.constant 0.000000e+00 : f32
      %110 = vector.shape_cast %103 : vector<1x128xi1> to vector<1x128xi1>
      %111 = vector.broadcast %110 : vector<1x128xi1> to vector<32x128xi1>
      %112 = vector.broadcast %cst_54 : f32 to vector<32x128xf32>
      %113 = arith.select %111, %96, %112 : vector<32x128xi1>, vector<32x128xf32>
      %cst_55 = arith.constant dense<0.000000e+00> : vector<32xf32>
      %114 = vector.multi_reduction <add>, %113, %cst_55 [1] : vector<32x128xf32> to vector<32xf32>
      %115 = vector.shape_cast %114 : vector<32xf32> to vector<32x1xf32>
      %116 = arith.mulf %115, %109 : vector<32x1xf32>
      %117 = vector.shape_cast %116 : vector<32x1xf32> to vector<1x32x1xf32>
      %cst_56 = arith.constant dense<0.000000e+00> : vector<1xf32>
      %118 = vector.multi_reduction <add>, %117, %cst_56 [1, 2] : vector<1x32x1xf32> to vector<1xf32>
      %119 = vector.shape_cast %118 : vector<1xf32> to vector<1x1x1xf32>
      %120 = vector.extract %119[0, 0, 0] : f32 from vector<1x1x1xf32>
      %121 = vector.broadcast %120 : f32 to vector<1x1xf32>
      %cst_57 = arith.constant 8.000000e+01 : f32
      %122 = vector.broadcast %cst_57 : f32 to vector<1x1xf32>
      %123 = arith.divf %121, %122 : vector<1x1xf32>
      %cst_58 = arith.constant 1.000000e+00 : f32
      %124 = vector.broadcast %cst_58 : f32 to vector<1x1xf32>
      %125 = arith.subf %124, %123 : vector<1x1xf32>
      %126 = arith.mulf %115, %115 : vector<32x1xf32>
      %127 = vector.shape_cast %126 : vector<32x1xf32> to vector<1x32x1xf32>
      %cst_59 = arith.constant dense<0.000000e+00> : vector<1xf32>
      %128 = vector.multi_reduction <add>, %127, %cst_59 [1, 2] : vector<1x32x1xf32> to vector<1xf32>
      %129 = vector.shape_cast %128 : vector<1xf32> to vector<1x1x1xf32>
      %130 = vector.extract %129[0, 0, 0] : f32 from vector<1x1x1xf32>
      %131 = vector.broadcast %130 : f32 to vector<1x1xf32>
      %cst_60 = arith.constant 5.000000e+00 : f32
      %132 = vector.broadcast %cst_60 : f32 to vector<1x1xf32>
      %133 = arith.subf %131, %132 : vector<1x1xf32>
      %cst_61 = arith.constant 2.000000e+01 : f32
      %134 = vector.broadcast %cst_61 : f32 to vector<1x1xf32>
      %135 = arith.divf %133, %134 : vector<1x1xf32>
      %cst_62 = arith.constant 1.000000e+00 : f32
      %136 = vector.broadcast %cst_62 : f32 to vector<1x1xf32>
      %137 = arith.subf %136, %135 : vector<1x1xf32>
      %138 = arith.subf %79, %84 : vector<1x1xf32>
      %139 = arith.addf %137, %125 : vector<1x1xf32>
      %cst_63 = arith.constant 1.000000e+00 : f32
      %140 = vector.broadcast %cst_63 : f32 to vector<1x1xf32>
      %141 = arith.mulf %140, %139 : vector<1x1xf32>
      %142 = arith.addf %138, %141 : vector<1x1xf32>
      %c0_64 = arith.constant 0 : index
      %c0_65 = arith.constant 0 : index
      %143 = vector.load %arg9[%c0_64, %c0_65] : memref<1x1xf32, #tpu.memory_space<vmem>>, vector<1x1xf32>
      tpu.vector_store %arg9[%c0_64, %c0_65], %142 {strides = array<i32>} : memref<1x1xf32, #tpu.memory_space<vmem>>, vector<1x1xf32>,
    } else {
    }
    return
  }
  func.func @transform_0(%arg0: i32) -> (i32, i32) {
    %c0_i32 = arith.constant 0 : i32
    %c0_i32_0 = arith.constant 0 : i32
    return %arg0, %c0_i32 : i32, i32
  }
  func.func @transform_1(%arg0: i32) -> (i32, i32) {
    %c0_i32 = arith.constant 0 : i32
    %c0_i32_0 = arith.constant 0 : i32
    %c0_i32_1 = arith.constant 0 : i32
    return %c0_i32, %c0_i32_0 : i32, i32
  }
  func.func @transform_2(%arg0: i32) -> (i32, i32) {
    %c0_i32 = arith.constant 0 : i32
    %c0_i32_0 = arith.constant 0 : i32
    %c0_i32_1 = arith.constant 0 : i32
    return %c0_i32, %c0_i32_0 : i32, i32
  }
  func.func @transform_3(%arg0: i32) -> (i32, i32) {
    %c0_i32 = arith.constant 0 : i32
    %c0_i32_0 = arith.constant 0 : i32
    %c0_i32_1 = arith.constant 0 : i32
    return %c0_i32, %c0_i32_0 : i32, i32
  }
  func.func @transform_4(%arg0: i32) -> (i32, i32) {
    %c0_i32 = arith.constant 0 : i32
    %c0_i32_0 = arith.constant 0 : i32
    %c0_i32_1 = arith.constant 0 : i32
    return %c0_i32, %c0_i32_0 : i32, i32
  }
  func.func @transform_5(%arg0: i32) -> (i32, i32) {
    %c0_i32 = arith.constant 0 : i32
    %c0_i32_0 = arith.constant 0 : i32
    return %arg0, %c0_i32 : i32, i32
  }
  func.func @transform_6(%arg0: i32) -> (i32, i32) {
    %c0_i32 = arith.constant 0 : i32
    %c0_i32_0 = arith.constant 0 : i32
    return %arg0, %c0_i32 : i32, i32
  }
  func.func @transform_7(%arg0: i32) -> (i32, i32) {
    %c0_i32 = arith.constant 0 : i32
    %c0_i32_0 = arith.constant 0 : i32
    return %arg0, %c0_i32 : i32, i32
  }
  func.func @transform_8(%arg0: i32) -> (i32, i32) {
    %c0_i32 = arith.constant 0 : i32
    %c0_i32_0 = arith.constant 0 : i32
    %c0_i32_1 = arith.constant 0 : i32
    return %c0_i32, %c0_i32_0 : i32, i32
  }
}

</mosaic_0001>

<bundles_post_ra>
// kernel: adaptation_forward.1
= control target key start
LH: loop header
LB: loop body
LE: loop exit
PB: predicated region body
PF: predicated region fallthrough
CT: control target
= control target key end

     0   :  { %s636_s0 = inlined_call_operand.vmem [shape: f32[8,32], index: 0, kind: input, shape index: {}]   ;;  %s637_s1 = inlined_call_operand.vmem [shape: f32[32,128], index: 1, kind: input, shape index: {}]   ;;  %s638_s2 = inlined_call_operand.vmem [shape: f32[1,128], index: 2, kind: input, shape index: {}]   ;;  %s639_s3 = inlined_call_operand.vmem [shape: f32[128,128], index: 3, kind: input, shape index: {}]   ;;  %s640_s4 = inlined_call_operand.vmem [shape: f32[1,128], index: 4, kind: input, shape index: {}]   ;;  %s641_s5 = inlined_call_operand.vmem [shape: s32[8,1], index: 5, kind: input, shape index: {}]   ;;  %s642_s6 = inlined_call_operand.vmem [shape: f32[8,128], index: 6, kind: output, shape index: {0}]   ;;  %s643_s7 = inlined_call_operand.vmem [shape: f32[8,128], index: 7, kind: output, shape index: {1}]   ;;  %s644_s8 = inlined_call_operand.hbm [shape: f32[1,1], index: 8, kind: output, shape index: {2}]  }
   0x1   :  { %v475_v0 = vld [vmem:[%s637_s1 + $0x18] sm:$0xff]  ;;  %v480_v1 = vld [vmem:[%s637_s1 + $0x10] sm:$0xff]  ;;  %v486_v2 = vld [vmem:[%s637_s1 + $0x8] sm:$0xff] }
   0x2   :  { %59 = vmatpush.msra.mxu0 %v475_v0 }
   0x3   :  { %14 = vsyncpa [#allocation5], 0  ;;  %v492_v3 = vld [vmem:[%s637_s1] sm:$0xff]  ;;  %vm43_vm0 = vcmask 261120   ;;  %v104_v5 = vld [vmem:[%s639_s3 + $0x78] sm:$0xff]  ;;  %v67_v10 = vlaneseq  ;;  %v420_v30 = vmov 0   ;;  %v211_v42 = vmul.f32 %v486_v2, %v486_v2 }
   0x4   :  { %60 = vmatpush.msra.mxu0 %v480_v1  ;;  %v34_v4 = vld [vmem:[%s636_s0] sm:$0xff]  ;;  %v103_v6 = vld [vmem:[%s639_s3 + $0x70] sm:$0xff]  ;;  %109 = vmatpush.msra.mxu1 %v104_v5  ;;  %v102_v7 = vld [vmem:[%s639_s3 + $0x68] sm:$0xff]  ;;  %v210_v41 = vmul.f32 %v492_v3, %v492_v3  ;;  %v212_v43 = vmul.f32 %v480_v1, %v480_v1  ;;  %v213_v45 = vmul.f32 %v475_v0, %v475_v0  ;;  %vm31_vm7 = vcmask 0   ;;  %s426_s28 = smov [#allocation4]   ;;  %s343_s10 = sshll.u32 %s644_s8, 4  ;;  %s344_s10 = int_to_ptr.hbm [resolvable:$true] %s343_s10 }
   0x5   :  { %v101_v8 = vld [vmem:[%s639_s3 + $0x60] sm:$0xff]  ;;  %v100_v9 = vld [vmem:[%s639_s3 + $0x58] sm:$0xff]  ;;  %v514_v11 = vand.u32 127, %v67_v10  ;;  %v99_v18 = vld [vmem:[%s639_s3 + $0x50] sm:$0xff]  ;;  %374 = vset.pattern.permute.xlu1 %v420_v30  ;;  %375 = vset.pattern.permute.xlu0 %v420_v30  ;;  %v421_v55 = vmov 0.0   ;;  %vm155_vm14 = vcmask 7168  }
   0x6   :  { %61 = vmatpush.msra.mxu0 %v486_v2  ;;  %110 = vmatpush.msra.mxu1 %v103_v6  ;;  %v376_v12 = vld [vmem:[%s638_s2] ss:$0 sm:$0xff]  ;;  %v98_v19 = vld [vmem:[%s639_s3 + $0x48] sm:$0xff]  ;;  %v96_v21 = vld [vmem:[%s639_s3 + $0x38] sm:$0xff]  ;;  %v214_v44 = vadd.f32 %v211_v42, %v210_v41  ;;  %32 = vst.msk [vmem:[#allocation2] sm:$0x1] %vm31_vm7, %v421_v55 }
   0x7   :  { %vm69_vm1 = vcmp.ge.s32.totalorder %v514_v11, 16  ;;  %vm70_vm2 = vcmp.lt.s32.totalorder %v514_v11, 21  ;;  %v97_v20 = vld [vmem:[%s639_s3 + $0x40] sm:$0xff]  ;;  %v95_v22 = vld [vmem:[%s639_s3 + $0x30] sm:$0xff]  ;;  %v94_v23 = vld [vmem:[%s639_s3 + $0x28] sm:$0xff]  ;;  %vm130_vm12 = vcmp.lt.s32.totalorder %v514_v11, 4 }
   0x8   :  { %62 = vmatpush.msra.mxu0 %v492_v3  ;;  %111 = vmatpush.msra.mxu1 %v102_v7  ;;  %vm523_vm3 = vmand %vm69_vm1, %vm70_vm2  ;;  %v93_v24 = vld [vmem:[%s639_s3 + $0x20] sm:$0xff]  ;;  %v92_v25 = vld [vmem:[%s639_s3 + $0x18] sm:$0xff]  ;;  %v215_v46 = vadd.f32 %v214_v44, %v212_v43  ;;  %33 = vst.msk [vmem:[#allocation3] sm:$0x1] %vm31_vm7, %v421_v55  ;;  %vm238_vm13 = vcmp.lt.s32.totalorder %v514_v11, 16  ;;  %s341_s29 = sshll.u32 %s426_s28, 4  ;;  %s342_s29 = int_to_ptr.vmem [resolvable:$true] %s341_s29 }
   0x9   :  { %356 = vmatmul.msk.f32.vlgmr.msra.gmra.mxu0 %vm43_vm0, %v34_v4  ;;  %v91_v26 = vld [vmem:[%s639_s3 + $0x10] sm:$0xff]  ;;  %v90_v27 = vld [vmem:[%s639_s3 + $0x8] sm:$0xff]  ;;  %v89_v28 = vld [vmem:[%s639_s3] sm:$0xff] }
   0xa   :  { %112 = vmatpush.msra.mxu1 %v101_v8  ;;  %v143_v29 = vld [vmem:[%s641_s5] sm:$0xff]  ;;  %v216_v47 = vadd.f32 %v215_v46, %v213_v45 }
   0xb   :  { %145 = vperm.xlu1 %374, %v143_v29   ;;  %v377_v62 = vld [vmem:[%s640_s4] ss:$0 sm:$0xff] }
   0xc   :  { %113 = vmatpush.msra.mxu1 %v100_v9  ;;  %v217_v48 = vrot.slane %v216_v47, 4 }
   0xe   :  { %114 = vmatpush.msra.mxu1 %v99_v18  ;;  %v218_v49 = vadd.f32 %v217_v48, %v216_v47 }
  0x10   :  { %115 = vmatpush.msra.mxu1 %v98_v19  ;;  %v219_v50 = vrot.slane %v218_v49, 2 }
  0x12   :  { %116 = vmatpush.msra.mxu1 %v97_v20  ;;  %v220_v51 = vadd.f32 %v219_v50, %v218_v49 }
  0x14   :  { %117 = vmatpush.msra.mxu1 %v96_v21  ;;  %v221_v52 = vrot.slane %v220_v51, 1 }
  0x16   :  { %118 = vmatpush.msra.mxu1 %v95_v22  ;;  %v222_v53 = vadd.f32 %v221_v52, %v220_v51 }
  0x18   :  { %119 = vmatpush.msra.mxu1 %v94_v23  ;;  %v223_v54 = vsel %vm70_vm2, %v222_v53, 1.0 }
  0x19   :  { %vm230_vm8 = vweird.f32 %v223_v54 }
  0x1a   :  { %120 = vmatpush.msra.mxu1 %v93_v24 }
  0x1c   :  { %121 = vmatpush.msra.mxu1 %v92_v25 }
  0x1e   :  { %122 = vmatpush.msra.mxu1 %v91_v26 }
  0x20   :  { %123 = vmatpush.msra.mxu1 %v90_v27 }
  0x22   :  { %124 = vmatpush.msra.mxu1 %v89_v28 }
  0x7d   :  { %v146_v60 = vpop.permute.xlu1 %145 }
  0x7e   :  { %vm147_vm10 = vcmp.eq.s32.totalorder %v514_v11, %v146_v60 }
  0x7f   :  { %v357_v5 = vsel %vm147_vm10, 1.0, %v421_v55 }
  0x86   :  { %v64_v13 = vpop.f32.mrf.mxu0 }
  0x87   :  { %v65_v14 = vadd.f32 %v376_v12, %v64_v13 }
  0x89   :  { %v72_v16 = vmul.f32 %v65_v14, %v65_v14 }
  0x8b   :  { %v73_v17 = vsel %vm523_vm3, %v72_v16, 0.0 }
  0x8c   :  { %74 = vadd.xlane.f32.xlu0 %v73_v17 }
  0xff   :  { %v75_v31 = vpop.xlane.xlu0 %74 }
 0x100   :  { %378 = vrsqrt.f32 %v75_v31  ;;  %vm82_vm5 = vweird.f32 %v75_v31 }
 0x101   :  { %380 = vrsqrt.f32 %v223_v54 }
 0x106   :  { %v379_v32 = vpop.eup %378 }
 0x107   :  { %v77_v33 = vmul.f32 %v379_v32, %v75_v31  ;;  %vm83_vm4 = vweird.f32 %v379_v32  ;;  %v381_v56 = vpop.eup %380 }
 0x108   :  { %vm84_vm6 = vmor %vm82_vm5, %vm83_vm4  ;;  %v225_v57 = vmul.f32 %v381_v56, %v223_v54  ;;  %vm231_vm9 = vweird.f32 %v381_v56 }
 0x109   :  { %v78_v34 = vmul.f32 %v379_v32, %v77_v33  ;;  %vm232_vm11 = vmor %vm230_vm8, %vm231_vm9 }
 0x10a   :  { %v226_v58 = vmul.f32 %v381_v56, %v225_v57 }
 0x10b   :  { %v79_v35 = vmul.f32 0.5, %v78_v34 }
 0x10c   :  { %v227_v59 = vmul.f32 0.5, %v226_v58 }
 0x10d   :  { %v80_v36 = vsub.f32 1.5, %v79_v35 }
 0x10e   :  { %v228_v61 = vsub.f32 1.5, %v227_v59 }
 0x10f   :  { %v81_v37 = vmul.f32 %v379_v32, %v80_v36 }
 0x110   :  { %v229_v63 = vmul.f32 %v381_v56, %v228_v61 }
 0x111   :  { %v85_v38 = vsel %vm84_vm6, %v379_v32, %v81_v37 }
 0x112   :  { %v565_v39 = vmul.f32 %v85_v38, %v65_v14  ;;  %v233_v7 = vsel %vm232_vm11, %v381_v56, %v229_v63 }
 0x113   :  { %v235_v10 = vmul.f32 %v233_v7, %v486_v2  ;;  %v234_v13 = vmul.f32 %v233_v7, %v492_v3  ;;  %v236_v2 = vmul.f32 %v233_v7, %v480_v1  ;;  %v237_v3 = vmul.f32 %v233_v7, %v475_v0 }
 0x114   :  { %v87_v40 = vsel %vm523_vm3, %v565_v39, %v65_v14  ;;  %v171_v20 = vsel %vm523_vm3, %v565_v39, 0.0 }
 0x115   :  { %88 = vst [vmem:[%s642_s6] sm:$0xff] %v87_v40  ;;  %125 = vmatmul.f32.vlgmr.msra.gmra.mxu1 %v87_v40  ;;  %v242_v12 = vsel %vm238_vm13, %v235_v10, 0.0  ;;  %v241_v14 = vsel %vm238_vm13, %v234_v13, 0.0  ;;  %v256_v16 = vsel %vm523_vm3, %v235_v10, 0.0  ;;  %v255_v17 = vsel %vm523_vm3, %v234_v13, 0.0 }
 0x116   :  { %v257_v18 = vsel %vm523_vm3, %v236_v2, 0.0  ;;  %v258_v19 = vsel %vm523_vm3, %v237_v3, 0.0  ;;  %v243_v21 = vsel %vm238_vm13, %v236_v2, 0.0  ;;  %v244_v1 = vsel %vm238_vm13, %v237_v3, 0.0 }
 0x192   :  { %v126_v4 = vpop.f32.mrf.mxu1 }
 0x193   :  { %v127_v6 = vadd.f32 %v377_v62, %v126_v4 }
 0x195   :  { %129 = vst [vmem:[%s643_s7] sm:$0xff] %v127_v6  ;;  %v131_v8 = vsel %vm130_vm12, %v127_v6, -inf  ;;  %v150_v9 = vmul.f32 %v357_v5, %v127_v6 }
 0x196   :  { %132 = vmax.xlane.f32.xlu0 %v131_v8 }
 0x197   :  { %151 = vadd.xlane.f32.xlu2 %v150_v9 }
 0x19e   :  { %247 = vadd.xlane.f32.xlu0 %v242_v12 }
 0x19f   :  { %245 = vadd.xlane.f32.xlu2 %v241_v14 }
 0x1a6   :  { %261 = vadd.xlane.f32.xlu0 %v256_v16 }
 0x1a7   :  { %259 = vadd.xlane.f32.xlu2 %v255_v17 }
 0x1ae   :  { %263 = vadd.xlane.f32.xlu0 %v257_v18 }
 0x1af   :  { %249 = vadd.xlane.f32.xlu2 %v243_v21 }
 0x1b6   :  { %265 = vadd.xlane.f32.xlu0 %v258_v19 }
 0x1b7   :  { %251 = vadd.xlane.f32.xlu2 %v244_v1 }
 0x1be   :  { %172 = vadd.xlane.f32.xlu0 %v171_v20 }
 0x209   :  { %v133_v22 = vpop.xlane.xlu0 %132 }
 0x20a   :  { %v134_v23 = vsub.f32 %v127_v6, %v133_v22  ;;  %v152_v26 = vpop.xlane.xlu2 %151 }
 0x20c   :  { %v135_v0 = vmul.f32 1.442695, %v134_v23 }
 0x20e   :  { %382 = vpow2.f32 %v135_v0 }
 0x211   :  { %v248_v15 = vpop.xlane.xlu0 %247 }
 0x212   :  { %v246_v28 = vpop.xlane.xlu2 %245 }
 0x214   :  { %v383_v24 = vpop.eup %382 }
 0x215   :  { %v137_v25 = vsel %vm130_vm12, %v383_v24, 0.0 }
 0x216   :  { %138 = vadd.xlane.f32.xlu1 %v137_v25 }
 0x219   :  { %v262_v27 = vpop.xlane.xlu0 %261 }
 0x21a   :  { %v260_v30 = vpop.xlane.xlu2 %259  ;;  %v298_v31 = vmul.f32 %v262_v27, %v262_v27  ;;  %v268_v44 = vmul.f32 %v262_v27, %v248_v15  ;;  %v423_v27 = vmov 20.0  }
 0x21b   :  { %v297_v32 = vmul.f32 %v260_v30, %v260_v30  ;;  %v267_v45 = vmul.f32 %v260_v30, %v246_v28  ;;  %v424_v28 = vmov 40.0  }
 0x21c   :  { %v302_v33 = vsel %vm155_vm14, %v298_v31, 0.0  ;;  %v272_v48 = vsel %vm155_vm14, %v268_v44, 0.0 }
 0x21d   :  { %v301_v35 = vsel %vm155_vm14, %v297_v32, 0.0  ;;  %v271_v49 = vsel %vm155_vm14, %v267_v45, 0.0 }
 0x21e   :  { %v303_v37 = vadd.f32 %v302_v33, %v301_v35  ;;  %v273_v54 = vadd.f32 %v272_v48, %v271_v49 }
 0x221   :  { %v264_v29 = vpop.xlane.xlu0 %263 }
 0x222   :  { %v299_v34 = vmul.f32 %v264_v29, %v264_v29  ;;  %v250_v43 = vpop.xlane.xlu2 %249 }
 0x223   :  { %v269_v50 = vmul.f32 %v264_v29, %v250_v43  ;;  %v425_v29 = vmov 8.0  }
 0x224   :  { %v304_v11 = vsel %vm155_vm14, %v299_v34, 0.0 }
 0x225   :  { %v305_v39 = vadd.f32 %v304_v11, %v303_v37  ;;  %v274_v55 = vsel %vm155_vm14, %v269_v50, 0.0 }
 0x226   :  { %v275_v58 = vadd.f32 %v274_v55, %v273_v54 }
 0x229   :  { %v266_v36 = vpop.xlane.xlu0 %265 }
 0x22a   :  { %v300_v38 = vmul.f32 %v266_v36, %v266_v36  ;;  %v252_v52 = vpop.xlane.xlu2 %251 }
 0x22b   :  { %v270_v56 = vmul.f32 %v266_v36, %v252_v52 }
 0x22c   :  { %v306_v40 = vsel %vm155_vm14, %v300_v38, 0.0 }
 0x22d   :  { %v307_v41 = vadd.f32 %v306_v40, %v305_v39  ;;  %v276_v59 = vsel %vm155_vm14, %v270_v56, 0.0  ;;  %v153_v40 = vld [vmem:[#allocation2] sm:$0x1] }
 0x22e   :  { %v277_v60 = vadd.f32 %v276_v59, %v275_v58 }
 0x22f   :  { %308 = vadd.xlane.f32.xlu1 %v307_v41  ;;  %v170_v41 = vld [vmem:[#allocation3] sm:$0x1] }
 0x231   :  { %v173_v61 = vpop.xlane.xlu0 %172 }
 0x232   :  { %v174_v62 = vrot.slane %v173_v61, 4 }
 0x234   :  { %v175_v63 = vadd.f32 %v174_v62, %v173_v61 }
 0x236   :  { %v176_v5 = vrot.slane %v175_v63, 2 }
 0x238   :  { %v177_v10 = vadd.f32 %v176_v5, %v175_v63 }
 0x23a   :  { %v178_v2 = vrot.slane %v177_v10, 1 }
 0x23c   :  { %v179_v1 = vadd.f32 %v178_v2, %v177_v10 }
 0x289   :  { %v139_v42 = vpop.xlane.xlu1 %138 }
 0x28a   :  { %384 = vlog2.f32 %v139_v42 }
 0x290   :  { %v385_v46 = vpop.eup %384 }
 0x291   :  { %v141_v47 = vmul.f32 0.6931472, %v385_v46 }
 0x293   :  { %v142_v51 = vadd.f32 %v141_v47, %v133_v22 }
 0x295   :  { %v154_v53 = vsub.f32 %v142_v51, %v152_v26  ;;  %v422_v26 = vmov 80.0  }
 0x296   :  { %386 = vrcp.f32 %v422_v26 }
 0x297   :  { %v156_v57 = vsel %vm155_vm14, %v154_v53, 0.0  ;;  %388 = vrcp.f32 %v423_v27 }
 0x298   :  { %157 = vadd.xlane.f32.xlu2 %v156_v57  ;;  %390 = vrcp.f32 %v424_v28 }
 0x299   :  { %392 = vrcp.f32 %v425_v29 }
 0x29c   :  { %v387_v30 = vpop.eup %386 }
 0x29d   :  { %v389_v31 = vpop.eup %388  ;;  %v289_v33 = vmul.f32 80.0, %v387_v30  ;;  %vm293_vm15 = vweird.f32 %v387_v30 }
 0x29e   :  { %v391_v32 = vpop.eup %390  ;;  %v320_v35 = vmul.f32 20.0, %v389_v31  ;;  %vm324_vm0 = vweird.f32 %v389_v31 }
 0x29f   :  { %v393_v34 = vpop.eup %392  ;;  %v198_v36 = vmul.f32 40.0, %v391_v32  ;;  %v290_v37 = vsub.f32 1.0, %v289_v33  ;;  %vm202_vm1 = vweird.f32 %v391_v32 }
 0x2a0   :  { %278 = vadd.xlane.f32.xlu2 %v277_v60  ;;  %v189_v11 = vmul.f32 8.0, %v393_v34  ;;  %v321_v38 = vsub.f32 1.0, %v320_v35  ;;  %vm193_vm2 = vweird.f32 %v393_v34 }
 0x2a1   :  { %v199_v39 = vsub.f32 1.0, %v198_v36  ;;  %v291_v42 = vmul.f32 %v387_v30, %v290_v37 }
 0x2a2   :  { %v309_v4 = vpop.xlane.xlu1 %308  ;;  %v190_v43 = vsub.f32 1.0, %v189_v11  ;;  %v322_v47 = vmul.f32 %v389_v31, %v321_v38 }
 0x2a3   :  { %v310_v6 = vrot.slane %v309_v4, 4  ;;  %v200_v48 = vmul.f32 %v391_v32, %v199_v39  ;;  %v292_v50 = vadd.f32 %v387_v30, %v291_v42 }
 0x2a4   :  { %v191_v51 = vmul.f32 %v393_v34, %v190_v43  ;;  %v323_v52 = vadd.f32 %v389_v31, %v322_v47 }
 0x2a5   :  { %v311_v12 = vadd.f32 %v310_v6, %v309_v4  ;;  %v201_v53 = vadd.f32 %v391_v32, %v200_v48  ;;  %v294_v54 = vsel %vm293_vm15, %v387_v30, %v292_v50 }
 0x2a6   :  { %v192_v55 = vadd.f32 %v393_v34, %v191_v51  ;;  %v325_v58 = vsel %vm324_vm0, %v389_v31, %v323_v52 }
 0x2a7   :  { %v312_v16 = vrot.slane %v311_v12, 2  ;;  %v203_v59 = vsel %vm202_vm1, %v391_v32, %v201_v53 }
 0x2a8   :  { %v194_v63 = vsel %vm193_vm2, %v393_v34, %v192_v55 }
 0x2a9   :  { %v313_v21 = vadd.f32 %v312_v16, %v311_v12 }
 0x2ab   :  { %v314_v0 = vrot.slane %v313_v21, 1 }
 0x2ad   :  { %v315_v15 = vadd.f32 %v314_v0, %v313_v21 }
 0x30b   :  { %v158_v7 = vpop.xlane.xlu2 %157 }
 0x30c   :  { %v159_v8 = vrot.slane %v158_v7, 4 }
 0x30e   :  { %v160_v9 = vadd.f32 %v159_v8, %v158_v7 }
 0x310   :  { %v161_v13 = vrot.slane %v160_v9, 2 }
 0x312   :  { %v162_v14 = vadd.f32 %v161_v13, %v160_v9 }
 0x313   :  { %v279_v17 = vpop.xlane.xlu2 %278 }
 0x314   :  { %v280_v18 = vrot.slane %v279_v17, 4  ;;  %v163_v3 = vrot.slane %v162_v14, 1 }
 0x316   :  { %v281_v19 = vadd.f32 %v280_v18, %v279_v17  ;;  %v164_v20 = vadd.f32 %v163_v3, %v162_v14 }
 0x318   :  { %v282_v22 = vrot.slane %v281_v19, 2  ;;  %359 = vpush %v164_v20 }
 0x319   :  { %361 = vpush %v179_v1 }
 0x31a   :  { %v283_v23 = vadd.f32 %v282_v22, %v281_v19 }
 0x31c   :  { %v284_v24 = vrot.slane %v283_v23, 1 }
 0x31e   :  { %v285_v25 = vadd.f32 %v284_v24, %v283_v23 }
 0x320   :  { %363 = vpush %v285_v25 }
 0x321   :  { %365 = vpush %v315_v15 }
 0x349   :  { %s360_s4 = spop %359 }
 0x34a   :  { %v166_v44 = vstv %s360_s4  ;;  %s362_s7 = spop %361 }
 0x34b   :  { %v167_v45 = vadd.f32 %v166_v44, %v153_v40  ;;  %v181_v46 = vstv %s362_s7 }
 0x34c   :  { %v182_v49 = vadd.f32 %v181_v46, %v170_v41 }
 0x34d   :  { %169 = vst.msk [vmem:[#allocation2] sm:$0x1] %vm31_vm7, %v167_v45 }
 0x34e   :  { %183 = vst.msk [vmem:[#allocation3] sm:$0x1] %vm31_vm7, %v182_v49 }
 0x351   :  { %s364_s2 = spop %363 }
 0x352   :  { %v287_v56 = vstv %s364_s2  ;;  %s366_s27 = spop %365 }
 0x353   :  { %v317_v57 = vstv %s366_s27  ;;  %v295_v60 = vmul.f32 %v294_v54, %v287_v56 }
 0x354   :  { %v358_v61 = vadd.f32 -5.0, %v317_v57  ;;  %v187_v62 = vld [vmem:[#allocation2] sm:$0x1] }
 0x355   :  { %v196_v4 = vld [vmem:[#allocation3] sm:$0x1]  ;;  %v296_v7 = vsub.f32 1.0, %v295_v60  ;;  %v195_v9 = vmul.f32 %v194_v63, %v187_v62 }
 0x356   :  { %v326_v5 = vmul.f32 %v358_v61, %v325_v58  ;;  %v204_v6 = vmul.f32 %v203_v59, %v196_v4 }
 0x358   :  { %v327_v8 = vsub.f32 1.0, %v326_v5  ;;  %v205_v10 = vmul.f32 0.1, %v204_v6 }
 0x35a   :  { %v329_v12 = vadd.f32 %v327_v8, %v296_v7  ;;  %v328_v13 = vsub.f32 %v195_v9, %v205_v10 }
 0x35c   :  { %v330_v14 = vadd.f32 %v329_v12, %v328_v13 }
 0x35e   :  { %331 = vst.msk [vmem:[#allocation4] sm:$0x1] %vm31_vm7, %v330_v14 }
 0x35f   :  { %346 = dma.vmem_to_hbm [thread:$0]  %s342_s29, 16, %s344_s10, [#allocation5]  }
 0x360   :  { %418 = dma.done.wait [#allocation5], 16  }
 0x361   :  { %419 = vsyncadd [#allocation5], 4294967280 }
 0x362   :  { %355 = vsyncpa [#allocation5], 1 }

</bundles_post_ra>
